<compile_context>
chip_gen: v5e
topology: v5e:2x2
jax: 0.10.0
libtpu: 0.0.40
codegen_flags: <defaults>
</compile_context>

<pallas_src>
import jax
import jax.numpy as jnp
from jax.experimental import pallas as pl
from jax.experimental.pallas import tpu as pltpu

LAMBDA_OPA = 0.001

_LANES = 128
_ROW_ALIGN = 16                      # sublane alignment; also covers bf16 (16,128) tiles
_RAY_ALIGN = _ROW_ALIGN * _LANES     # 2048 rays


def _nerf_loss_kernel(rgb_ref, rgbs_ref, opa_ref, rgb_out_ref, opa_out_ref):
    # rgb_ref / rgbs_ref : (C, tile_rows, 128)   (any float dtype; upcast here)
    # opa_ref / outputs  : (tile_rows, 128)
    c = rgb_ref.shape[0]

    # Per-ray mean squared error over channels: unrolled VPU adds over the C
    # leading slabs, then a single compile-time-constant multiply (1/C).
    acc = None
    for ci in range(c):
        d = rgb_ref[ci].astype(jnp.float32) - rgbs_ref[ci].astype(jnp.float32)
        sq = d * d
        acc = sq if acc is None else acc + sq
    rgb_out_ref[...] = acc * (1.0 / c)

    # Opacity entropy regularizer: lambda * (-o * log(o)), o = opacity + 1e-8.
    o = opa_ref[...].astype(jnp.float32) + 1e-8
    opa_out_ref[...] = LAMBDA_OPA * (-o * jnp.log(o))


def _round_up(x, m):
    return ((x + m - 1) // m) * m


def nerf_loss(pred_rgb, rgbs, opacity, *, channel_major=False, max_tile_rows=2048):
    """NeRFLoss forward.

    pred_rgb, rgbs : (N, C) floats  -- or (C, N) if channel_major=True.
    opacity        : (N,) floats.
    Returns dict with 'rgb': (N,) f32 and 'opacity': (N,) f32.

    For the lowest HBM traffic, produce predictions/targets channel-major
    upstream and pass channel_major=True (skips the transpose pass).
    """
    if channel_major:
        c, n = pred_rgb.shape
        rgb_cm, rgbs_cm = pred_rgb, rgbs
    else:
        n, c = pred_rgb.shape
        # TODO(synk): emit (C, N) channel-major predictions/targets from the
        # producer (or fuse this transpose into it) to drop this extra HBM
        # read+write relayout pass entirely.
        rgb_cm = jnp.transpose(pred_rgb)   # (C, N)
        rgbs_cm = jnp.transpose(rgbs)      # (C, N)

    # Minimal padding: only up to the 16x128 alignment unit, not a full tile.
    n_pad = _round_up(max(n, 1), _RAY_ALIGN)
    total_rows = n_pad // _LANES                       # multiple of 16
    tile_rows = min(int(max_tile_rows) // _ROW_ALIGN * _ROW_ALIGN or _ROW_ALIGN,
                    total_rows)
    grid = (pl.cdiv(total_rows, tile_rows),)           # last tile may be ragged

    pad = n_pad - n
    opa = opacity
    if pad:
        rgb_cm = jnp.pad(rgb_cm, ((0, 0), (0, pad)))
        rgbs_cm = jnp.pad(rgbs_cm, ((0, 0), (0, pad)))
        opa = jnp.pad(opa, (0, pad))

    # Lane-dense slabs: (C, rows, 128) and (rows, 128). Native dtype kept
    # through the DMA (bf16 inputs halve the dominant traffic).
    rgb_cm = rgb_cm.reshape(c, total_rows, _LANES)
    rgbs_cm = rgbs_cm.reshape(c, total_rows, _LANES)
    opa_2d = opa.reshape(total_rows, _LANES)

    rgb_loss, opa_loss = pl.pallas_call(
        _nerf_loss_kernel,
        out_shape=(
            jax.ShapeDtypeStruct((total_rows, _LANES), jnp.float32),
            jax.ShapeDtypeStruct((total_rows, _LANES), jnp.float32),
        ),
        grid_spec=pl.GridSpec(
            grid=grid,
            in_specs=[
                pl.BlockSpec((c, tile_rows, _LANES), lambda i: (0, i, 0)),
                pl.BlockSpec((c, tile_rows, _LANES), lambda i: (0, i, 0)),
                pl.BlockSpec((tile_rows, _LANES), lambda i: (i, 0)),
            ],
            out_specs=(
                pl.BlockSpec((tile_rows, _LANES), lambda i: (i, 0)),
                pl.BlockSpec((tile_rows, _LANES), lambda i: (i, 0)),
            ),
        ),
        compiler_params=pltpu.CompilerParams(
            dimension_semantics=("parallel",),
            vmem_limit_bytes=40 * 1024 * 1024,
        ),
    )(rgb_cm, rgbs_cm, opa_2d)

    return {
        "rgb": rgb_loss.reshape(n_pad)[:n],
        "opacity": opa_loss.reshape(n_pad)[:n],
    }


def _reference(pred_rgb, rgbs, opacity):
    ref_rgb = jnp.mean((pred_rgb.astype(jnp.float32) - rgbs.astype(jnp.float32)) ** 2,
                       axis=-1)
    o = opacity.astype(jnp.float32) + 1e-8
    ref_opa = LAMBDA_OPA * (-o * jnp.log(o))
    return ref_rgb, ref_opa


if __name__ == "__main__":
    key = jax.random.PRNGKey(0)
    k1, k2, k3 = jax.random.split(key, 3)

    # --- Case 1: small ray count (exercises tail padding), C = 3 rgb channels.
    N, C = 300, 3
    pred_rgb = jax.random.uniform(k1, (N, C), dtype=jnp.float32)
    rgbs = jax.random.uniform(k2, (N, C), dtype=jnp.float32)
    opacity = jax.random.uniform(k3, (N,), dtype=jnp.float32)

    out = nerf_loss(pred_rgb, rgbs, opacity)
    jax.block_until_ready(out)
    ref_rgb, ref_opa = _reference(pred_rgb, rgbs, opacity)
    assert out["rgb"].shape == (N,) and out["opacity"].shape == (N,)
    assert jnp.allclose(out["rgb"], ref_rgb, atol=1e-6, rtol=1e-5)
    assert jnp.allclose(out["opacity"], ref_opa, atol=1e-6, rtol=1e-5)

    # --- Case 2: channel-major fast path (no transpose pass in the wrapper).
    out_cm = nerf_loss(jnp.transpose(pred_rgb), jnp.transpose(rgbs), opacity,
                       channel_major=True)
    jax.block_until_ready(out_cm)
    assert jnp.allclose(out_cm["rgb"], ref_rgb, atol=1e-6, rtol=1e-5)
    assert jnp.allclose(out_cm["opacity"], ref_opa, atol=1e-6, rtol=1e-5)

    # --- Case 3: multi-tile grid with a ragged final tile (cdiv grid path).
    k4, k5, k6 = jax.random.split(jax.random.PRNGKey(1), 3)
    N2 = 5000
    pred2 = jax.random.uniform(k4, (N2, C), dtype=jnp.float32)
    rgbs2 = jax.random.uniform(k5, (N2, C), dtype=jnp.float32)
    opa2 = jax.random.uniform(k6, (N2,), dtype=jnp.float32)
    out2 = nerf_loss(pred2, rgbs2, opa2, max_tile_rows=32)   # grid=(2,), ragged tail
    jax.block_until_ready(out2)
    ref_rgb2, ref_opa2 = _reference(pred2, rgbs2, opa2)
    assert jnp.allclose(out2["rgb"], ref_rgb2, atol=1e-6, rtol=1e-5)
    assert jnp.allclose(out2["opacity"], ref_opa2, atol=1e-6, rtol=1e-5)

    print("KERNEL_OK")
</pallas_src>

<mosaic_0001>
module attributes {stable_mosaic.version = 11 : i64} {
  func.func @_nerf_loss_kernel(%arg0: i32, %arg1: memref<3x16x128xf32, #tpu.memory_space<vmem>>, %arg2: memref<3x16x128xf32, #tpu.memory_space<vmem>>, %arg3: memref<16x128xf32, #tpu.memory_space<vmem>>, %arg4: memref<16x128xf32, #tpu.memory_space<vmem>>, %arg5: memref<16x128xf32, #tpu.memory_space<vmem>>) attributes {dimension_semantics = [#tpu.dimension_semantics<parallel>], iteration_bounds = array<i64: 1>, scalar_prefetch = 0 : i64, scratch_operands = 0 : i64, tpu.core_type = #tpu.core_type<tc>, window_params = [{transform_indices = @transform_0, window_bounds = array<i64: 3, 16, 128>}, {transform_indices = @transform_1, window_bounds = array<i64: 3, 16, 128>}, {transform_indices = @transform_2, window_bounds = array<i64: 16, 128>}, {transform_indices = @transform_3, window_bounds = array<i64: 16, 128>}, {transform_indices = @transform_4, window_bounds = array<i64: 16, 128>}]} {
    %c0 = arith.constant 0 : index
    %c0_0 = arith.constant 0 : index
    %c0_1 = arith.constant 0 : index
    %0 = vector.load %arg1[%c0, %c0_0, %c0_1] : memref<3x16x128xf32, #tpu.memory_space<vmem>>, vector<1x16x128xf32>
    %1 = vector.shape_cast %0 : vector<1x16x128xf32> to vector<16x128xf32>
    %c0_2 = arith.constant 0 : index
    %c0_3 = arith.constant 0 : index
    %c0_4 = arith.constant 0 : index
    %2 = vector.load %arg2[%c0_2, %c0_3, %c0_4] : memref<3x16x128xf32, #tpu.memory_space<vmem>>, vector<1x16x128xf32>
    %3 = vector.shape_cast %2 : vector<1x16x128xf32> to vector<16x128xf32>
    %4 = arith.subf %1, %3 : vector<16x128xf32>
    %5 = arith.mulf %4, %4 : vector<16x128xf32>
    %c1 = arith.constant 1 : index
    %c0_5 = arith.constant 0 : index
    %c0_6 = arith.constant 0 : index
    %6 = vector.load %arg1[%c1, %c0_5, %c0_6] : memref<3x16x128xf32, #tpu.memory_space<vmem>>, vector<1x16x128xf32>
    %7 = vector.shape_cast %6 : vector<1x16x128xf32> to vector<16x128xf32>
    %c1_7 = arith.constant 1 : index
    %c0_8 = arith.constant 0 : index
    %c0_9 = arith.constant 0 : index
    %8 = vector.load %arg2[%c1_7, %c0_8, %c0_9] : memref<3x16x128xf32, #tpu.memory_space<vmem>>, vector<1x16x128xf32>
    %9 = vector.shape_cast %8 : vector<1x16x128xf32> to vector<16x128xf32>
    %10 = arith.subf %7, %9 : vector<16x128xf32>
    %11 = arith.mulf %10, %10 : vector<16x128xf32>
    %12 = arith.addf %5, %11 : vector<16x128xf32>
    %c2 = arith.constant 2 : index
    %c0_10 = arith.constant 0 : index
    %c0_11 = arith.constant 0 : index
    %13 = vector.load %arg1[%c2, %c0_10, %c0_11] : memref<3x16x128xf32, #tpu.memory_space<vmem>>, vector<1x16x128xf32>
    %14 = vector.shape_cast %13 : vector<1x16x128xf32> to vector<16x128xf32>
    %c2_12 = arith.constant 2 : index
    %c0_13 = arith.constant 0 : index
    %c0_14 = arith.constant 0 : index
    %15 = vector.load %arg2[%c2_12, %c0_13, %c0_14] : memref<3x16x128xf32, #tpu.memory_space<vmem>>, vector<1x16x128xf32>
    %16 = vector.shape_cast %15 : vector<1x16x128xf32> to vector<16x128xf32>
    %17 = arith.subf %14, %16 : vector<16x128xf32>
    %18 = arith.mulf %17, %17 : vector<16x128xf32>
    %19 = arith.addf %12, %18 : vector<16x128xf32>
    %cst = arith.constant 0.333333343 : f32
    %20 = vector.broadcast %cst : f32 to vector<16x128xf32>
    %21 = arith.mulf %19, %20 : vector<16x128xf32>
    %c0_15 = arith.constant 0 : index
    %c0_16 = arith.constant 0 : index
    %22 = vector.load %arg4[%c0_15, %c0_16] : memref<16x128xf32, #tpu.memory_space<vmem>>, vector<16x128xf32>
    tpu.vector_store %arg4[%c0_15, %c0_16], %21 {strides = array<i32>} : memref<16x128xf32, #tpu.memory_space<vmem>>, vector<16x128xf32>,
    %c0_17 = arith.constant 0 : index
    %c0_18 = arith.constant 0 : index
    %23 = vector.load %arg3[%c0_17, %c0_18] : memref<16x128xf32, #tpu.memory_space<vmem>>, vector<16x128xf32>
    %cst_19 = arith.constant 9.99999993E-9 : f32
    %24 = vector.broadcast %cst_19 : f32 to vector<16x128xf32>
    %25 = arith.addf %23, %24 : vector<16x128xf32>
    %cst_20 = arith.constant 0.000000e+00 : f32
    %26 = vector.broadcast %cst_20 : f32 to vector<16x128xf32>
    %27 = arith.subf %26, %25 : vector<16x128xf32>
    %28 = math.log %25 : vector<16x128xf32>
    %29 = arith.mulf %27, %28 : vector<16x128xf32>
    %cst_21 = arith.constant 1.000000e-03 : f32
    %30 = vector.broadcast %cst_21 : f32 to vector<16x128xf32>
    %31 = arith.mulf %30, %29 : vector<16x128xf32>
    %c0_22 = arith.constant 0 : index
    %c0_23 = arith.constant 0 : index
    %32 = vector.load %arg5[%c0_22, %c0_23] : memref<16x128xf32, #tpu.memory_space<vmem>>, vector<16x128xf32>
    tpu.vector_store %arg5[%c0_22, %c0_23], %31 {strides = array<i32>} : memref<16x128xf32, #tpu.memory_space<vmem>>, vector<16x128xf32>,
    return
  }
  func.func @transform_0(%arg0: i32) -> (i32, i32, i32) {
    %c0_i32 = arith.constant 0 : i32
    %c0_i32_0 = arith.constant 0 : i32
    %c0_i32_1 = arith.constant 0 : i32
    return %c0_i32, %arg0, %c0_i32_0 : i32, i32, i32
  }
  func.func @transform_1(%arg0: i32) -> (i32, i32, i32) {
    %c0_i32 = arith.constant 0 : i32
    %c0_i32_0 = arith.constant 0 : i32
    %c0_i32_1 = arith.constant 0 : i32
    return %c0_i32, %arg0, %c0_i32_0 : i32, i32, i32
  }
  func.func @transform_2(%arg0: i32) -> (i32, i32) {
    %c0_i32 = arith.constant 0 : i32
    %c0_i32_0 = arith.constant 0 : i32
    return %arg0, %c0_i32 : i32, i32
  }
  func.func @transform_3(%arg0: i32) -> (i32, i32) {
    %c0_i32 = arith.constant 0 : i32
    %c0_i32_0 = arith.constant 0 : i32
    return %arg0, %c0_i32 : i32, i32
  }
  func.func @transform_4(%arg0: i32) -> (i32, i32) {
    %c0_i32 = arith.constant 0 : i32
    %c0_i32_0 = arith.constant 0 : i32
    return %arg0, %c0_i32 : i32, i32
  }
}

</mosaic_0001>

<bundles_post_ra>
// kernel: tpu_custom_call.1
= control target key start
LH: loop header
LB: loop body
LE: loop exit
PB: predicated region body
PF: predicated region fallthrough
CT: control target
= control target key end

     0   :  { %10 = vsyncpa [#allocation3], 0  ;;  %s356_s0 = inlined_call_operand.hbm [shape: f32[3,16,128], index: 0, kind: input, shape index: {}]   ;;  %s357_s1 = inlined_call_operand.hbm [shape: f32[3,16,128], index: 1, kind: input, shape index: {}]   ;;  %s358_s2 = inlined_call_operand.hbm [shape: f32[16,128], index: 2, kind: input, shape index: {}]   ;;  %s359_s3 = inlined_call_operand.hbm [shape: f32[16,128], index: 3, kind: output, shape index: {0}]   ;;  %s360_s4 = inlined_call_operand.hbm [shape: f32[16,128], index: 4, kind: output, shape index: {1}]  }
   0x1   :  { %11 = vsyncpa [#allocation6], 0 }
   0x2   :  { %12 = vsyncpa [#allocation4], 0 }
   0x3   :  { %13 = vsyncpa [#allocation10], 0  ;;  %s31_s17 = sshll.u32 %s357_s1, 4  ;;  %s294_s18 = smov [#allocation5]   ;;  %s32_s17 = int_to_ptr.hbm [resolvable:$true] %s31_s17 }
   0x4   :  { %s33_s19 = sshll.u32 %s294_s18, 4  ;;  %s18_s22 = sshll.u32 %s356_s0, 4  ;;  %s34_s19 = int_to_ptr.vmem [resolvable:$true] %s33_s19  ;;  %s19_s22 = int_to_ptr.hbm [resolvable:$true] %s18_s22 }
   0x5   :  { %s295_s23 = smov 128   ;;  %s296_s24 = smov 8  }
   0x6   :  { %39 = dma.hbm_to_vmem [thread:$0]  %s32_s17, 768, %s34_s19, [#allocation6], %s295_s23, %s295_s23, %s296_s24  }
   0x7   :  { %s297_s25 = smov [#allocation2]   ;;  %s44_s1 = sshll.u32 %s358_s2, 4  ;;  %s45_s1 = int_to_ptr.hbm [resolvable:$true] %s44_s1 }
   0x8   :  { %s20_s26 = sshll.u32 %s297_s25, 4  ;;  %s298_s0 = smov [#allocation7]   ;;  %s21_s26 = int_to_ptr.vmem [resolvable:$true] %s20_s26 }
   0x9   :  { %26 = dma.hbm_to_vmem [thread:$0]  %s19_s22, 768, %s21_s26, [#allocation3], %s295_s23, %s295_s23, %s296_s24  }
   0xa   :  { %s46_s29 = sshll.u32 %s298_s0, 4  ;;  %s47_s29 = int_to_ptr.vmem [resolvable:$true] %s46_s29 }
   0xb   :  { %52 = dma.hbm_to_vmem [thread:$0]  %s45_s1, 256, %s47_s29, [#allocation6], %s295_s23, %s295_s23, %s296_s24  }
   0xc   :  { %286 = dma.done.wait [#allocation3], 768  }
   0xd   :  { %287 = vsyncadd [#allocation3], 4294966528 }
   0xe   :  { %288 = dma.done.wait [#allocation6], 1024  }
   0xf   :  { %289 = vsyncadd [#allocation6], 4294966272  ;;  %v65_v0 = vld [vmem:[#allocation2] sm:$0xff]  ;;  %v67_v1 = vld [vmem:[#allocation5] sm:$0xff]  ;;  %s299_s2 = smov [#allocation8]   ;;  %s123_s7 = sshll.u32 %s359_s3, 4  ;;  %s124_s7 = int_to_ptr.hbm [resolvable:$true] %s123_s7 }
  0x10   :  { %v74_v2 = vld [vmem:[#allocation2 + $0x10] sm:$0xff]  ;;  %v69_v3 = vsub.f32 %v65_v0, %v67_v1  ;;  %v77_v4 = vld [vmem:[#allocation5 + $0x10] sm:$0xff]  ;;  %v66_v9 = vld [vmem:[#allocation2 + $0x8] sm:$0xff]  ;;  %s121_s30 = sshll.u32 %s299_s2, 4  ;;  %s300_s8 = smov [#allocation9]   ;;  %s122_s30 = int_to_ptr.vmem [resolvable:$true] %s121_s30 }
  0x11   :  { %v86_v5 = vld [vmem:[#allocation2 + $0x20] sm:$0xff]  ;;  %v89_v6 = vld [vmem:[#allocation5 + $0x20] sm:$0xff]  ;;  %v79_v7 = vsub.f32 %v74_v2, %v77_v4  ;;  %v68_v10 = vld [vmem:[#allocation5 + $0x8] sm:$0xff]  ;;  %s134_s3 = sshll.u32 %s300_s8, 4  ;;  %s136_s11 = sshll.u32 %s360_s4, 4  ;;  %s135_s3 = int_to_ptr.vmem [resolvable:$true] %s134_s3  ;;  %s137_s11 = int_to_ptr.hbm [resolvable:$true] %s136_s11 }
  0x12   :  { %v91_v8 = vsub.f32 %v86_v5, %v89_v6  ;;  %v75_v11 = vld [vmem:[#allocation2 + $0x18] sm:$0xff]  ;;  %v71_v12 = vmul.f32 %v69_v3, %v69_v3  ;;  %v70_v13 = vsub.f32 %v66_v9, %v68_v10  ;;  %v78_v14 = vld [vmem:[#allocation5 + $0x18] sm:$0xff]  ;;  %v101_v21 = vld [vmem:[#allocation7] sm:$0xff] }
  0x13   :  { %v87_v15 = vld [vmem:[#allocation2 + $0x28] sm:$0xff]  ;;  %v90_v16 = vld [vmem:[#allocation5 + $0x28] sm:$0xff]  ;;  %v81_v17 = vmul.f32 %v79_v7, %v79_v7  ;;  %v80_v19 = vsub.f32 %v75_v11, %v78_v14  ;;  %v103_v24 = vadd.f32 1e-08, %v101_v21 }
  0x14   :  { %v93_v18 = vmul.f32 %v91_v8, %v91_v8  ;;  %v92_v20 = vsub.f32 %v87_v15, %v90_v16  ;;  %v102_v22 = vld [vmem:[#allocation7 + $0x8] sm:$0xff]  ;;  %v72_v23 = vmul.f32 %v70_v13, %v70_v13 }
  0x15   :  { %v104_v25 = vadd.f32 1e-08, %v102_v22  ;;  %v83_v26 = vadd.f32 %v81_v17, %v71_v12  ;;  %v82_v27 = vmul.f32 %v80_v19, %v80_v19  ;;  %162 = vlog2.f32 %v103_v24 }
  0x16   :  { %v94_v28 = vmul.f32 %v92_v20, %v92_v20  ;;  %v105_v34 = vsub.f32 0.0, %v103_v24 }
  0x17   :  { %v95_v29 = vadd.f32 %v93_v18, %v83_v26  ;;  %v84_v30 = vadd.f32 %v82_v27, %v72_v23  ;;  %164 = vlog2.f32 %v104_v25  ;;  %v106_v36 = vsub.f32 0.0, %v104_v25 }
  0x19   :  { %v97_v31 = vmul.f32 0.33333334, %v95_v29  ;;  %v96_v32 = vadd.f32 %v94_v28, %v84_v30 }
  0x1b   :  { %99 = vst [vmem:[#allocation8] sm:$0xff] %v97_v31  ;;  %v98_v33 = vmul.f32 0.33333334, %v96_v32  ;;  %v163_v35 = vpop.eup %162 }
  0x1c   :  { %v108_v38 = vmul.f32 0.6931472, %v163_v35 }
  0x1d   :  { %v165_v37 = vpop.eup %164  ;;  %100 = vst [vmem:[#allocation8 + $0x8] sm:$0xff] %v98_v33 }
  0x1e   :  { %v110_v39 = vmul.f32 0.6931472, %v165_v37  ;;  %129 = dma.vmem_to_hbm [thread:$0]  %s122_s30, 256, %s124_s7, [#allocation4], %s295_s23, %s295_s23, %s296_s24   ;;  %v111_v40 = vmul.f32 %v108_v38, %v105_v34 }
  0x20   :  { %v112_v41 = vmul.f32 %v110_v39, %v106_v36  ;;  %v113_v42 = vmul.f32 0.001, %v111_v40 }
  0x22   :  { %v114_v43 = vmul.f32 0.001, %v112_v41  ;;  %115 = vst [vmem:[#allocation9] sm:$0xff] %v113_v42 }
  0x24   :  { %116 = vst [vmem:[#allocation9 + $0x8] sm:$0xff] %v114_v43 }
  0x25   :  { %142 = dma.vmem_to_hbm [thread:$0]  %s135_s3, 256, %s137_s11, [#allocation10], %s295_s23, %s295_s23, %s296_s24  }
  0x26   :  { %290 = dma.done.wait [#allocation4], 256  }
  0x27   :  { %291 = vsyncadd [#allocation4], 4294967040 }
  0x28   :  { %292 = dma.done.wait [#allocation10], 256  }
  0x29   :  { %293 = vsyncadd [#allocation10], 4294967040 }
  0x2a   :  { %151 = vsyncpa [#allocation3], 1 }
  0x2b   :  { %152 = vsyncpa [#allocation6], 1 }
  0x2c   :  { %153 = vsyncpa [#allocation4], 1 }
  0x2d   :  { %154 = vsyncpa [#allocation10], 1 }

</bundles_post_ra>
